<compile_context>
chip_gen: v5e
topology: v5e:2x2
jax: 0.10.0
libtpu: 0.0.40
codegen_flags: <defaults>
</compile_context>

<pallas_src>
import functools

import jax
import jax.numpy as jnp
import numpy as np
from jax.experimental import pallas as pl
from jax.experimental.pallas import tpu as pltpu

_VMEM_LIMIT = 64 * 1024 * 1024  # explicit scoped-VMEM cap (safe on v5e/v6e/v7x)


# ----------------------------------------------------------------------------
# Small helpers
# ----------------------------------------------------------------------------
def _round_up(x, m):
    return ((x + m - 1) // m) * m


def _tile_rows(M, K, N, budget_bytes=8 * 1024 * 1024, max_tm=1024):
    """Pick an M-tile so 2*(tm*K + tm*N)*4B (double-buffered in+out) fits the budget."""
    per_row = 2 * (K + N) * 4
    tm = min(max_tm, max(8, budget_bytes // max(per_row, 1)))
    tm = max(8, (tm // 8) * 8)
    return min(tm, _round_up(M, 8))


def _pad_rows(x, Mp):
    M = x.shape[0]
    return x if Mp == M else jnp.pad(x, ((0, Mp - M), (0, 0)))


# ----------------------------------------------------------------------------
# Pallas kernels
# ----------------------------------------------------------------------------
def _linear_kernel(x_ref, w_ref, b_ref, o_ref, *, relu):
    acc = jnp.dot(x_ref[...], w_ref[...], preferred_element_type=jnp.float32)
    acc = acc + b_ref[...]
    if relu:
        acc = jnp.maximum(acc, 0.0)
    o_ref[...] = acc


def pallas_linear(x, w, b, *, relu=False):
    """out = [relu](x @ w + b); x:[M,K], w:[K,N], b:[N]. Tiled + pipelined over M."""
    M, K = x.shape
    N = w.shape[1]
    tm = _tile_rows(M, K, N)
    Mp = _round_up(M, tm)
    xp = _pad_rows(x, Mp)
    out = pl.pallas_call(
        functools.partial(_linear_kernel, relu=relu),
        out_shape=jax.ShapeDtypeStruct((Mp, N), jnp.float32),
        grid=(Mp // tm,),
        in_specs=[
            pl.BlockSpec((tm, K), lambda i: (i, 0)),      # streamed row tiles
            pl.BlockSpec((K, N), lambda i: (0, 0)),       # resident weight
            pl.BlockSpec((1, N), lambda i: (0, 0)),       # resident bias
        ],
        out_specs=pl.BlockSpec((tm, N), lambda i: (i, 0)),
        compiler_params=pltpu.CompilerParams(
            dimension_semantics=("parallel",),
            vmem_limit_bytes=_VMEM_LIMIT),
    )(xp, w, b.reshape(1, N))
    return out if Mp == M else out[:M]


def _head_kernel(x_ref, w_ref, b_ref, o_ref, *, n_actions):
    # One lane-dense (tm, 128k) GEMM: lanes [0, A) = pi logits, lane A = value, rest pad.
    out = jnp.dot(x_ref[...], w_ref[...], preferred_element_type=jnp.float32)
    out = out + b_ref[...]
    lane = jax.lax.broadcasted_iota(jnp.int32, out.shape, 1)
    act = lane < n_actions
    logits = jnp.where(act, out, -jnp.inf)                 # mask pad + value lanes
    m = jnp.max(logits, axis=-1, keepdims=True)
    e = jnp.exp(logits - m)                                # pad lanes -> exp(-inf)=0
    pi = e / jnp.sum(e, axis=-1, keepdims=True)
    o_ref[...] = jnp.where(act, pi, jnp.where(lane == n_actions, out, 0.0))


def pallas_heads(x, pi_w, pi_b, v_w, v_b):
    """Fused pi/value heads. Returns (pi[M,A], v[M])."""
    M, Hd = x.shape
    A = pi_w.shape[1]
    Np = _round_up(A + 1, 128)                             # lane-dense output width
    w = jnp.zeros((Hd, Np), jnp.float32)
    w = w.at[:, :A].set(pi_w).at[:, A].set(v_w[:, 0])
    b = jnp.zeros((1, Np), jnp.float32)
    b = b.at[0, :A].set(pi_b).at[0, A].set(v_b[0])

    tm = _tile_rows(M, Hd, Np)
    Mp = _round_up(M, tm)
    xp = _pad_rows(x, Mp)
    out = pl.pallas_call(
        functools.partial(_head_kernel, n_actions=A),
        out_shape=jax.ShapeDtypeStruct((Mp, Np), jnp.float32),
        grid=(Mp // tm,),
        in_specs=[
            pl.BlockSpec((tm, Hd), lambda i: (i, 0)),
            pl.BlockSpec((Hd, Np), lambda i: (0, 0)),
            pl.BlockSpec((1, Np), lambda i: (0, 0)),
        ],
        out_specs=pl.BlockSpec((tm, Np), lambda i: (i, 0)),
        compiler_params=pltpu.CompilerParams(
            dimension_semantics=("parallel",),
            vmem_limit_bytes=_VMEM_LIMIT),
    )(xp, w, b)
    out = out[:M]
    return out[:, :A], out[:, A]


def _lstm_kernel(xw_ref, whh_ref, h0_ref, c0_ref, out_ref, hn_ref, cn_ref,
                 h_scr, c_scr, *, steps):
    t = pl.program_id(0)

    @pl.when(t == 0)
    def _():
        h_scr[...] = h0_ref[...]
        c_scr[...] = c0_ref[...]

    H = h_scr.shape[-1]
    whh = whh_ref[...]                      # load resident w_hh into vregs once/chunk

    def step(u, carry):
        h, c = carry
        # x @ w_ih + b was precomputed by the pipelined GEMM; only h @ w_hh is serial.
        gates = xw_ref[u] + jnp.dot(h, whh, preferred_element_type=jnp.float32)
        i = jax.nn.sigmoid(gates[:, 0 * H:1 * H])
        f = jax.nn.sigmoid(gates[:, 1 * H:2 * H])
        g = jnp.tanh(gates[:, 2 * H:3 * H])
        o = jax.nn.sigmoid(gates[:, 3 * H:4 * H])
        c_new = f * c + i * g
        h_new = o * jnp.tanh(c_new)
        out_ref[u] = h_new
        return (h_new, c_new)

    # (h, c) carried in vregs across the unrolled chunk; scratch touched only at the edges.
    h_fin, c_fin = jax.lax.fori_loop(0, steps, step, (h_scr[...], c_scr[...]),
                                     unroll=True)
    h_scr[...] = h_fin
    c_scr[...] = c_fin

    @pl.when(t == pl.num_programs(0) - 1)
    def _():
        hn_ref[...] = h_fin
        cn_ref[...] = c_fin


def _lstm_chunk(T):
    for u in (8, 4, 2, 1):
        if T % u == 0:
            return u
    return 1


def pallas_lstm(xw_seq, w_hh, h0, c0):
    """LSTM over time given precomputed input projections xw_seq:[T,B,4H]."""
    T, B, G = xw_seq.shape
    H = h0.shape[-1]
    U = _lstm_chunk(T)
    return pl.pallas_call(
        functools.partial(_lstm_kernel, steps=U),
        out_shape=(jax.ShapeDtypeStruct((T, B, H), jnp.float32),
                   jax.ShapeDtypeStruct((B, H), jnp.float32),
                   jax.ShapeDtypeStruct((B, H), jnp.float32)),
        grid=(T // U,),
        in_specs=[
            pl.BlockSpec((U, B, G), lambda t: (t, 0, 0)),   # U timesteps per grid step
            pl.BlockSpec((H, G), lambda t: (0, 0)),         # resident w_hh
            pl.BlockSpec((B, H), lambda t: (0, 0)),
            pl.BlockSpec((B, H), lambda t: (0, 0)),
        ],
        out_specs=(
            pl.BlockSpec((U, B, H), lambda t: (t, 0, 0)),
            pl.BlockSpec((B, H), lambda t: (0, 0)),
            pl.BlockSpec((B, H), lambda t: (0, 0)),
        ),
        scratch_shapes=[pltpu.VMEM((B, H), jnp.float32),
                        pltpu.VMEM((B, H), jnp.float32)],
        compiler_params=pltpu.CompilerParams(
            dimension_semantics=("arbitrary",),
            vmem_limit_bytes=_VMEM_LIMIT),
    )(xw_seq, w_hh, h0, c0)


# ----------------------------------------------------------------------------
# Glue: NHWC im2col for conv-as-GEMM (no output transpose between layers).
# Patch column ordering is (ki, kj, c); the weight is permuted to match.
# ----------------------------------------------------------------------------
def im2col_nhwc(x, kh, kw, sh, sw, ph, pw):
    N, H, W, C = x.shape
    xp = jnp.pad(x, ((0, 0), (ph, ph), (pw, pw), (0, 0)))
    oh = (H + 2 * ph - kh) // sh + 1
    ow = (W + 2 * pw - kw) // sw + 1
    cols = [xp[:, ki:ki + sh * oh:sh, kj:kj + sw * ow:sw, :]
            for ki in range(kh) for kj in range(kw)]
    cols = jnp.stack(cols, axis=3)                     # [N, oh, ow, kh*kw, C]
    cols = cols.reshape(N * oh * ow, kh * kw * C)      # col index = (ki*kw+kj)*C + c
    return cols, oh, ow


def conv2d_relu_nhwc(x, w, b, stride, padding, scale=1.0):
    """x: NHWC, w: torch OIHW. Returns NHWC output (GEMM result, no transpose)."""
    OC, C, kh, kw = w.shape
    cols, oh, ow = im2col_nhwc(x, kh, kw, stride, stride, padding, padding)
    wm = w.transpose(2, 3, 1, 0).reshape(kh * kw * C, OC)
    if scale != 1.0:
        wm = wm * scale                                # fold input scaling into weights
    out = pallas_linear(cols, wm, b, relu=True)
    N = x.shape[0]
    return out.reshape(N, oh, ow, OC)


# ----------------------------------------------------------------------------
# Parameters (deterministic, PyTorch-default-like uniform init, torch layouts)
# ----------------------------------------------------------------------------
def init_params(key, image_shape, output_size, fc_size, lstm_size,
                channels, kernel_sizes, strides, paddings):
    C, H, W = image_shape
    keys = iter(jax.random.split(key, 32))

    def uni(shape, fan_in):
        bound = 1.0 / np.sqrt(fan_in)
        return jax.random.uniform(next(keys), shape, jnp.float32, -bound, bound)

    params = {}
    conv = []
    in_c, h, w = C, H, W
    for oc, ks, st, pd in zip(channels, kernel_sizes, strides, paddings):
        fan = in_c * ks * ks
        conv.append(dict(w=uni((oc, in_c, ks, ks), fan), b=uni((oc,), fan),
                         stride=st, pad=pd))
        h = (h + 2 * pd - ks) // st + 1
        w = (w + 2 * pd - ks) // st + 1
        in_c = oc
    conv_out = in_c * h * w
    params["conv"] = conv
    params["conv_shape"] = (in_c, h, w)                 # (C_out, H_out, W_out)
    params["fc_w"] = uni((conv_out, fc_size), conv_out)  # NCHW-flatten row order (torch)
    params["fc_b"] = uni((fc_size,), conv_out)
    lstm_in = fc_size + output_size + 1
    params["w_ih"] = uni((lstm_in, 4 * lstm_size), lstm_size)
    params["w_hh"] = uni((lstm_size, 4 * lstm_size), lstm_size)
    params["lstm_b"] = uni((4 * lstm_size,), lstm_size)  # b_ih + b_hh combined
    params["pi_w"] = uni((lstm_size, output_size), lstm_size)
    params["pi_b"] = uni((output_size,), lstm_size)
    params["v_w"] = uni((lstm_size, 1), lstm_size)
    params["v_b"] = uni((1,), lstm_size)
    return params


# ----------------------------------------------------------------------------
# Forward pass (Pallas) and pure-JAX reference
# ----------------------------------------------------------------------------
def atari_lstm_forward(params, image, prev_action, prev_reward, init_h, init_c):
    T, B = image.shape[:2]
    C, H, W = image.shape[2:]
    x = image.astype(jnp.float32).reshape(T * B, C, H, W)
    x = x.transpose(0, 2, 3, 1)                          # one-time NCHW->NHWC relayout

    # conv1 folds the 1/255 normalization into its weights (trace-time, free)
    for li, layer in enumerate(params["conv"]):
        x = conv2d_relu_nhwc(x, layer["w"], layer["b"], layer["stride"], layer["pad"],
                             scale=(1.0 / 255.0) if li == 0 else 1.0)
    x = x.reshape(T * B, -1)                             # NHWC flatten: (h, w, c)

    # Reorder fc weight rows (once, at trace time) from torch NCHW-flatten to NHWC-flatten.
    Cc, Hc, Wc = params["conv_shape"]
    fc_size = params["fc_w"].shape[1]
    fc_w = params["fc_w"].reshape(Cc, Hc, Wc, fc_size)
    fc_w = fc_w.transpose(1, 2, 0, 3).reshape(Cc * Hc * Wc, fc_size)
    fc_out = pallas_linear(x, fc_w, params["fc_b"], relu=True)

    lstm_in = jnp.concatenate(
        [fc_out.reshape(T, B, -1),
         prev_action.reshape(T, B, -1).astype(jnp.float32),
         prev_reward.reshape(T, B, 1).astype(jnp.float32)], axis=2)
    In = lstm_in.shape[-1]
    Hs = init_h.shape[-1]

    # Hoisted input projection: batched, pipelined GEMM over all T*B rows.
    xw = pallas_linear(lstm_in.reshape(T * B, In), params["w_ih"], params["lstm_b"])
    xw = xw.reshape(T, B, 4 * Hs)

    lstm_out, hn, cn = pallas_lstm(xw, params["w_hh"], init_h, init_c)
    flat = lstm_out.reshape(T * B, Hs)

    pi, v = pallas_heads(flat, params["pi_w"], params["pi_b"],
                         params["v_w"], params["v_b"])
    pi = pi.reshape(T, B, -1)
    v = v.reshape(T, B)
    next_rnn_state = (hn[None], cn[None])                # [num_layers=1, B, H]
    return pi, v, next_rnn_state


def reference_forward(params, image, prev_action, prev_reward, init_h, init_c):
    T, B = image.shape[:2]
    hp = jax.lax.Precision.HIGHEST
    x = (image.astype(jnp.float32) / 255.0).reshape(T * B, *image.shape[2:])
    for layer in params["conv"]:
        x = jax.lax.conv_general_dilated(
            x, layer["w"], (layer["stride"],) * 2,
            [(layer["pad"], layer["pad"])] * 2,
            dimension_numbers=("NCHW", "OIHW", "NCHW"), precision=hp)
        x = jax.nn.relu(x + layer["b"][None, :, None, None])
    x = x.reshape(T * B, -1)
    fc_out = jax.nn.relu(jnp.dot(x, params["fc_w"], precision=hp) + params["fc_b"])
    lstm_in = jnp.concatenate(
        [fc_out.reshape(T, B, -1),
         prev_action.reshape(T, B, -1).astype(jnp.float32),
         prev_reward.reshape(T, B, 1).astype(jnp.float32)], axis=2)
    H = init_h.shape[-1]

    def step(carry, xt):
        h, c = carry
        gates = (jnp.dot(xt, params["w_ih"], precision=hp)
                 + jnp.dot(h, params["w_hh"], precision=hp) + params["lstm_b"])
        i = jax.nn.sigmoid(gates[:, :H])
        f = jax.nn.sigmoid(gates[:, H:2 * H])
        g = jnp.tanh(gates[:, 2 * H:3 * H])
        o = jax.nn.sigmoid(gates[:, 3 * H:])
        c = f * c + i * g
        h = o * jnp.tanh(c)
        return (h, c), h

    (hn, cn), outs = jax.lax.scan(step, (init_h, init_c), lstm_in)
    flat = outs.reshape(T * B, -1)
    logits = jnp.dot(flat, params["pi_w"], precision=hp) + params["pi_b"]
    pi = jax.nn.softmax(logits, axis=-1)
    v = (jnp.dot(flat, params["v_w"], precision=hp) + params["v_b"]).squeeze(-1)
    return pi.reshape(T, B, -1), v.reshape(T, B), (hn[None], cn[None])


# ----------------------------------------------------------------------------
if __name__ == "__main__":
    # Small shapes consistent with the module defaults.
    T, B = 4, 2
    image_shape = (4, 16, 16)            # (C, H, W) frame stack
    output_size = 6                      # action dim
    fc_size, lstm_size = 32, 32
    channels, kernel_sizes, strides, paddings = [16, 32], [8, 4], [4, 2], [0, 1]

    key = jax.random.PRNGKey(0)
    kp, ki, ka, kr, kh, kc = jax.random.split(key, 6)

    params = init_params(kp, image_shape, output_size, fc_size, lstm_size,
                         channels, kernel_sizes, strides, paddings)

    image = jax.random.randint(ki, (T, B) + image_shape, 0, 256, jnp.int32).astype(jnp.uint8)
    prev_action = jax.nn.one_hot(
        jax.random.randint(ka, (T, B), 0, output_size), output_size, dtype=jnp.float32)
    prev_reward = jax.random.normal(kr, (T, B), jnp.float32)
    init_h = 0.1 * jax.random.normal(kh, (B, lstm_size), jnp.float32)
    init_c = 0.1 * jax.random.normal(kc, (B, lstm_size), jnp.float32)

    pi, v, (hn, cn) = jax.block_until_ready(
        atari_lstm_forward(params, image, prev_action, prev_reward, init_h, init_c))

    pi_r, v_r, (hn_r, cn_r) = jax.block_until_ready(
        reference_forward(params, image, prev_action, prev_reward, init_h, init_c))

    np.testing.assert_allclose(np.asarray(pi), np.asarray(pi_r), rtol=2e-3, atol=2e-3)
    np.testing.assert_allclose(np.asarray(v), np.asarray(v_r), rtol=2e-3, atol=2e-3)
    np.testing.assert_allclose(np.asarray(hn), np.asarray(hn_r), rtol=2e-3, atol=2e-3)
    np.testing.assert_allclose(np.asarray(cn), np.asarray(cn_r), rtol=2e-3, atol=2e-3)

    assert pi.shape == (T, B, output_size) and v.shape == (T, B)
    assert hn.shape == (1, B, lstm_size) and cn.shape == (1, B, lstm_size)
    print("KERNEL_OK")
</pallas_src>

<mosaic_0001>
module attributes {stable_mosaic.version = 11 : i64} {
  func.func @_linear_kernel(%arg0: i32, %arg1: memref<72x256xf32, #tpu.memory_space<vmem>>, %arg2: memref<256x16xf32, #tpu.memory_space<vmem>>, %arg3: memref<1x16xf32, #tpu.memory_space<vmem>>, %arg4: memref<72x16xf32, #tpu.memory_space<vmem>>) attributes {dimension_semantics = [#tpu.dimension_semantics<parallel>], iteration_bounds = array<i64: 1>, scalar_prefetch = 0 : i64, scratch_operands = 0 : i64, tpu.core_type = #tpu.core_type<tc>, window_params = [{transform_indices = @transform_0, window_bounds = array<i64: 72, 256>}, {pipeline_mode = #tpu.pipeline_mode<synchronous>, transform_indices = @transform_1, window_bounds = array<i64: 256, 16>}, {pipeline_mode = #tpu.pipeline_mode<synchronous>, transform_indices = @transform_2, window_bounds = array<i64: 1, 16>}, {transform_indices = @transform_3, window_bounds = array<i64: 72, 16>}]} {
    %c0 = arith.constant 0 : index
    %c0_0 = arith.constant 0 : index
    %0 = vector.load %arg1[%c0, %c0_0] : memref<72x256xf32, #tpu.memory_space<vmem>>, vector<72x256xf32>
    %c0_1 = arith.constant 0 : index
    %c0_2 = arith.constant 0 : index
    %1 = vector.load %arg2[%c0_1, %c0_2] : memref<256x16xf32, #tpu.memory_space<vmem>>, vector<256x16xf32>
    %cst = arith.constant dense<0.000000e+00> : vector<72x16xf32>
    %2 = tpu.matmul %0, %1, %cst {dimension_numbers = #tpu.dot_dimension_numbers<[1], [0], [0], [1], [0, 0, 1, 1], [], []>} : vector<72x256xf32>, vector<256x16xf32>, vector<72x16xf32> -> vector<72x16xf32>
    %c0_3 = arith.constant 0 : index
    %c0_4 = arith.constant 0 : index
    %3 = vector.load %arg3[%c0_3, %c0_4] : memref<1x16xf32, #tpu.memory_space<vmem>>, vector<1x16xf32>
    %4 = vector.broadcast %3 : vector<1x16xf32> to vector<72x16xf32>
    %5 = arith.addf %2, %4 : vector<72x16xf32>
    %cst_5 = arith.constant 0.000000e+00 : f32
    %6 = vector.broadcast %cst_5 : f32 to vector<72x16xf32>
    %7 = arith.maximumf %5, %6 : vector<72x16xf32>
    %c0_6 = arith.constant 0 : index
    %c0_7 = arith.constant 0 : index
    %8 = vector.load %arg4[%c0_6, %c0_7] : memref<72x16xf32, #tpu.memory_space<vmem>>, vector<72x16xf32>
    tpu.vector_store %arg4[%c0_6, %c0_7], %7 {strides = array<i32>} : memref<72x16xf32, #tpu.memory_space<vmem>>, vector<72x16xf32>,
    return
  }
  func.func @transform_0(%arg0: i32) -> (i32, i32) {
    %c0_i32 = arith.constant 0 : i32
    %c0_i32_0 = arith.constant 0 : i32
    return %arg0, %c0_i32 : i32, i32
  }
  func.func @transform_1(%arg0: i32) -> (i32, i32) {
    %c0_i32 = arith.constant 0 : i32
    %c0_i32_0 = arith.constant 0 : i32
    %c0_i32_1 = arith.constant 0 : i32
    return %c0_i32, %c0_i32_0 : i32, i32
  }
  func.func @transform_2(%arg0: i32) -> (i32, i32) {
    %c0_i32 = arith.constant 0 : i32
    %c0_i32_0 = arith.constant 0 : i32
    %c0_i32_1 = arith.constant 0 : i32
    return %c0_i32, %c0_i32_0 : i32, i32
  }
  func.func @transform_3(%arg0: i32) -> (i32, i32) {
    %c0_i32 = arith.constant 0 : i32
    %c0_i32_0 = arith.constant 0 : i32
    return %arg0, %c0_i32 : i32, i32
  }
}

</mosaic_0001>

<bundles_post_ra>
// kernel: tpu_custom_call.1
= control target key start
LH: loop header
LB: loop body
LE: loop exit
PB: predicated region body
PF: predicated region fallthrough
CT: control target
= control target key end

     0   :  { %vm165_vm0 = vcmask 130048   ;;  %s421_s1 = inlined_call_operand.vmem [shape: f32[256,16], index: 1, kind: input, shape index: {}]   ;;  %s422_s0 = inlined_call_operand.vmem [shape: f32[72,256], index: 0, kind: input, shape index: {}]   ;;  %s423_s2 = inlined_call_operand.vmem [shape: f32[1,16], index: 2, kind: input, shape index: {}]   ;;  %s424_s3 = inlined_call_operand.vmem [shape: f32[72,16], index: 3, kind: output, shape index: {}]  }
   0x1   :  { %v47_v0 = vld [vmem:[%s421_s1 + $0x78] sm:$0xff]  ;;  %v46_v2 = vld [vmem:[%s421_s1 + $0x70] sm:$0xff]  ;;  %v45_v4 = vld [vmem:[%s421_s1 + $0x68] sm:$0xff] }
   0x2   :  { %v63_v1 = vld [vmem:[%s421_s1 + $0xf8] sm:$0xff]  ;;  %179 = vmatpush.msra.mxu2 %v47_v0  ;;  %v62_v3 = vld [vmem:[%s421_s1 + $0xf0] sm:$0xff]  ;;  %v61_v5 = vld [vmem:[%s421_s1 + $0xe8] sm:$0xff]  ;;  %68 = vmatpush.msra.mxu0 %v47_v0 }
   0x3   :  { %112 = vmatpush.msra.mxu1 %v63_v1  ;;  %195 = vmatpush.msra.mxu3 %v63_v1  ;;  %v44_v6 = vld [vmem:[%s421_s1 + $0x60] sm:$0xff]  ;;  %v43_v8 = vld [vmem:[%s421_s1 + $0x58] sm:$0xff]  ;;  %v42_v10 = vld [vmem:[%s421_s1 + $0x50] sm:$0xff] }
   0x4   :  { %180 = vmatpush.msra.mxu2 %v46_v2  ;;  %v60_v7 = vld [vmem:[%s421_s1 + $0xe0] sm:$0xff]  ;;  %69 = vmatpush.msra.mxu0 %v46_v2  ;;  %v59_v9 = vld [vmem:[%s421_s1 + $0xd8] sm:$0xff]  ;;  %v58_v11 = vld [vmem:[%s421_s1 + $0xd0] sm:$0xff] }
   0x5   :  { %113 = vmatpush.msra.mxu1 %v62_v3  ;;  %196 = vmatpush.msra.mxu3 %v62_v3  ;;  %v41_v12 = vld [vmem:[%s421_s1 + $0x48] sm:$0xff]  ;;  %v40_v14 = vld [vmem:[%s421_s1 + $0x40] sm:$0xff]  ;;  %v39_v16 = vld [vmem:[%s421_s1 + $0x38] sm:$0xff] }
   0x6   :  { %181 = vmatpush.msra.mxu2 %v45_v4  ;;  %70 = vmatpush.msra.mxu0 %v45_v4  ;;  %v57_v13 = vld [vmem:[%s421_s1 + $0xc8] sm:$0xff]  ;;  %v56_v15 = vld [vmem:[%s421_s1 + $0xc0] sm:$0xff]  ;;  %v55_v17 = vld [vmem:[%s421_s1 + $0xb8] sm:$0xff] }
   0x7   :  { %114 = vmatpush.msra.mxu1 %v61_v5  ;;  %197 = vmatpush.msra.mxu3 %v61_v5  ;;  %v38_v18 = vld [vmem:[%s421_s1 + $0x30] sm:$0xff]  ;;  %v37_v20 = vld [vmem:[%s421_s1 + $0x28] sm:$0xff]  ;;  %v36_v22 = vld [vmem:[%s421_s1 + $0x20] sm:$0xff] }
   0x8   :  { %182 = vmatpush.msra.mxu2 %v44_v6  ;;  %71 = vmatpush.msra.mxu0 %v44_v6  ;;  %v54_v19 = vld [vmem:[%s421_s1 + $0xb0] sm:$0xff]  ;;  %v53_v21 = vld [vmem:[%s421_s1 + $0xa8] sm:$0xff]  ;;  %v52_v23 = vld [vmem:[%s421_s1 + $0xa0] sm:$0xff] }
   0x9   :  { %115 = vmatpush.msra.mxu1 %v60_v7  ;;  %198 = vmatpush.msra.mxu3 %v60_v7  ;;  %v35_v24 = vld [vmem:[%s421_s1 + $0x18] sm:$0xff]  ;;  %v34_v26 = vld [vmem:[%s421_s1 + $0x10] sm:$0xff]  ;;  %v33_v28 = vld [vmem:[%s421_s1 + $0x8] sm:$0xff] }
   0xa   :  { %183 = vmatpush.msra.mxu2 %v43_v8  ;;  %72 = vmatpush.msra.mxu0 %v43_v8  ;;  %v51_v25 = vld [vmem:[%s421_s1 + $0x98] sm:$0xff]  ;;  %v50_v27 = vld [vmem:[%s421_s1 + $0x90] sm:$0xff]  ;;  %v49_v29 = vld [vmem:[%s421_s1 + $0x88] sm:$0xff] }
   0xb   :  { %116 = vmatpush.msra.mxu1 %v59_v9  ;;  %199 = vmatpush.msra.mxu3 %v59_v9  ;;  %v32_v30 = vld [vmem:[%s421_s1] sm:$0xff]  ;;  %v15_v33 = vld [vmem:[%s422_s0 + $0x8] sm:$0xff]  ;;  %v25_v35 = vld [vmem:[%s422_s0 + $0x58] sm:$0xff] }
   0xc   :  { %184 = vmatpush.msra.mxu2 %v42_v10  ;;  %73 = vmatpush.msra.mxu0 %v42_v10  ;;  %v48_v31 = vld [vmem:[%s421_s1 + $0x80] sm:$0xff]  ;;  %v24_v36 = vld [vmem:[%s422_s0 + $0x50] sm:$0xff]  ;;  %v17_v37 = vld [vmem:[%s422_s0 + $0x18] sm:$0xff] }
   0xd   :  { %117 = vmatpush.msra.mxu1 %v58_v11  ;;  %200 = vmatpush.msra.mxu3 %v58_v11  ;;  %v22_v32 = vld [vmem:[%s422_s0 + $0x40] sm:$0xff]  ;;  %v16_v38 = vld [vmem:[%s422_s0 + $0x10] sm:$0xff]  ;;  %v27_v39 = vld [vmem:[%s422_s0 + $0x68] sm:$0xff] }
   0xe   :  { %185 = vmatpush.msra.mxu2 %v41_v12  ;;  %74 = vmatpush.msra.mxu0 %v41_v12  ;;  %v14_v34 = vld [vmem:[%s422_s0] sm:$0xff]  ;;  %v19_v41 = vld [vmem:[%s422_s0 + $0x28] sm:$0xff]  ;;  %v29_v43 = vld [vmem:[%s422_s0 + $0x78] sm:$0xff] }
   0xf   :  { %118 = vmatpush.msra.mxu1 %v57_v13  ;;  %201 = vmatpush.msra.mxu3 %v57_v13  ;;  %v26_v40 = vld [vmem:[%s422_s0 + $0x60] sm:$0xff]  ;;  %v28_v44 = vld [vmem:[%s422_s0 + $0x70] sm:$0xff]  ;;  %v21_v45 = vld [vmem:[%s422_s0 + $0x38] sm:$0xff] }
  0x10   :  { %186 = vmatpush.msra.mxu2 %v40_v14  ;;  %75 = vmatpush.msra.mxu0 %v40_v14  ;;  %v18_v42 = vld [vmem:[%s422_s0 + $0x20] sm:$0xff]  ;;  %v20_v46 = vld [vmem:[%s422_s0 + $0x30] sm:$0xff]  ;;  %v31_v47 = vld [vmem:[%s422_s0 + $0x88] sm:$0xff] }
  0x11   :  { %119 = vmatpush.msra.mxu1 %v56_v15  ;;  %202 = vmatpush.msra.mxu3 %v56_v15  ;;  %v30_v48 = vld [vmem:[%s422_s0 + $0x80] sm:$0xff]  ;;  %v23_v49 = vld [vmem:[%s422_s0 + $0x48] sm:$0xff] }
  0x12   :  { %187 = vmatpush.msra.mxu2 %v39_v16  ;;  %76 = vmatpush.msra.mxu0 %v39_v16  ;;  %v211_v50 = vld [vmem:[%s423_s2] ss:$0 sm:$0xff] }
  0x13   :  { %120 = vmatpush.msra.mxu1 %v55_v17  ;;  %203 = vmatpush.msra.mxu3 %v55_v17 }
  0x14   :  { %188 = vmatpush.msra.mxu2 %v38_v18  ;;  %77 = vmatpush.msra.mxu0 %v38_v18 }
  0x15   :  { %121 = vmatpush.msra.mxu1 %v54_v19  ;;  %204 = vmatpush.msra.mxu3 %v54_v19 }
  0x16   :  { %189 = vmatpush.msra.mxu2 %v37_v20  ;;  %78 = vmatpush.msra.mxu0 %v37_v20 }
  0x17   :  { %122 = vmatpush.msra.mxu1 %v53_v21  ;;  %205 = vmatpush.msra.mxu3 %v53_v21 }
  0x18   :  { %190 = vmatpush.msra.mxu2 %v36_v22  ;;  %79 = vmatpush.msra.mxu0 %v36_v22 }
  0x19   :  { %123 = vmatpush.msra.mxu1 %v52_v23  ;;  %206 = vmatpush.msra.mxu3 %v52_v23 }
  0x1a   :  { %191 = vmatpush.msra.mxu2 %v35_v24  ;;  %80 = vmatpush.msra.mxu0 %v35_v24 }
  0x1b   :  { %124 = vmatpush.msra.mxu1 %v51_v25  ;;  %207 = vmatpush.msra.mxu3 %v51_v25 }
  0x1c   :  { %192 = vmatpush.msra.mxu2 %v34_v26  ;;  %81 = vmatpush.msra.mxu0 %v34_v26 }
  0x1d   :  { %125 = vmatpush.msra.mxu1 %v50_v27  ;;  %208 = vmatpush.msra.mxu3 %v50_v27 }
  0x1e   :  { %193 = vmatpush.msra.mxu2 %v33_v28  ;;  %82 = vmatpush.msra.mxu0 %v33_v28 }
  0x1f   :  { %126 = vmatpush.msra.mxu1 %v49_v29  ;;  %209 = vmatpush.msra.mxu3 %v49_v29 }
  0x20   :  { %194 = vmatpush.msra.mxu2 %v32_v30  ;;  %83 = vmatpush.msra.mxu0 %v32_v30 }
  0x21   :  { %127 = vmatpush.msra.mxu1 %v48_v31  ;;  %96 = vmatmul.f32.vlgmr.msra.gmra.mxu2 %v22_v32 }
  0x22   :  { %128 = vmatmul.f32.vlgmr.msra.gmra.mxu1 %v15_v33  ;;  %210 = vmatpush.msra.mxu3 %v48_v31 }
  0x23   :  { %84 = vmatmul.f32.vlgmr.msra.gmra.mxu0 %v14_v34  ;;  %143 = vmatmul.f32.vlgmr.msra.gmra.mxu3 %v25_v35 }
  0x29   :  { %99 = vmatmul.f32.gmra.mxu2 %v24_v36 }
  0x2a   :  { %131 = vmatmul.f32.gmra.mxu1 %v17_v37 }
  0x2b   :  { %87 = vmatmul.f32.gmra.mxu0 %v16_v38  ;;  %146 = vmatmul.f32.gmra.mxu3 %v27_v39 }
  0x31   :  { %102 = vmatmul.f32.gmra.mxu2 %v26_v40 }
  0x32   :  { %134 = vmatmul.f32.gmra.mxu1 %v19_v41 }
  0x33   :  { %90 = vmatmul.f32.gmra.mxu0 %v18_v42  ;;  %149 = vmatmul.f32.gmra.mxu3 %v29_v43 }
  0x39   :  { %105 = vmatmul.f32.gmra.mxu2 %v28_v44 }
  0x3a   :  { %137 = vmatmul.f32.gmra.mxu1 %v21_v45 }
  0x3b   :  { %93 = vmatmul.f32.gmra.mxu0 %v20_v46  ;;  %152 = vmatmul.f32.gmra.mxu3 %v31_v47 }
  0x41   :  { %108 = vmatmul.f32.gmra.mxu2 %v30_v48 }
  0x42   :  { %140 = vmatmul.f32.gmra.mxu1 %v23_v49 }
  0x9f   :  { %v129_v51 = vpop.f32.mrf.mxu1 }
  0xa0   :  { %v85_v52 = vpop.f32.mrf.mxu0 }
  0xa1   :  { %v86_v53 = vadd.f32 %v211_v50, %v85_v52 }
  0xa3   :  { %v130_v54 = vadd.f32 %v129_v51, %v86_v53 }
  0xa4   :  { %v97_v55 = vpop.f32.mrf.mxu2 }
  0xa5   :  { %v156_v56 = vmax.f32 %v130_v54, 0.0  ;;  %v98_v19 = vadd.f32 %v211_v50, %v97_v55 }
  0xa6   :  { %v144_v58 = vpop.f32.mrf.mxu3 }
  0xa7   :  { %v132_v57 = vpop.f32.mrf.mxu1  ;;  %166 = vst.msk [vmem:[%s424_s3] sm:$0xff] %vm165_vm0, %v156_v56 }
  0xa8   :  { %v88_v59 = vpop.f32.mrf.mxu0 }
  0xa9   :  { %v89_v60 = vadd.f32 %v211_v50, %v88_v59 }
  0xab   :  { %v133_v61 = vadd.f32 %v132_v57, %v89_v60 }
  0xac   :  { %v100_v62 = vpop.f32.mrf.mxu2 }
  0xad   :  { %v157_v63 = vmax.f32 %v133_v61, 0.0  ;;  %v101_v0 = vadd.f32 %v211_v50, %v100_v62 }
  0xae   :  { %v147_v4 = vpop.f32.mrf.mxu3 }
  0xaf   :  { %v135_v1 = vpop.f32.mrf.mxu1  ;;  %167 = vst.msk [vmem:[%s424_s3 + $0x8] sm:$0xff] %vm165_vm0, %v157_v63  ;;  %v145_v2 = vadd.f32 %v144_v58, %v101_v0 }
  0xb0   :  { %v91_v3 = vpop.f32.mrf.mxu0 }
  0xb1   :  { %v161_v5 = vmax.f32 %v145_v2, 0.0  ;;  %v92_v6 = vadd.f32 %v211_v50, %v91_v3 }
  0xb3   :  { %171 = vst.msk [vmem:[%s424_s3 + $0x28] sm:$0xff] %vm165_vm0, %v161_v5  ;;  %v136_v7 = vadd.f32 %v135_v1, %v92_v6 }
  0xb4   :  { %v103_v8 = vpop.f32.mrf.mxu2 }
  0xb5   :  { %v158_v9 = vmax.f32 %v136_v7, 0.0  ;;  %v104_v10 = vadd.f32 %v211_v50, %v103_v8 }
  0xb6   :  { %v150_v16 = vpop.f32.mrf.mxu3 }
  0xb7   :  { %v138_v11 = vpop.f32.mrf.mxu1  ;;  %168 = vst.msk [vmem:[%s424_s3 + $0x10] sm:$0xff] %vm165_vm0, %v158_v9  ;;  %v148_v12 = vadd.f32 %v147_v4, %v104_v10 }
  0xb8   :  { %v94_v13 = vpop.f32.mrf.mxu0 }
  0xb9   :  { %v162_v14 = vmax.f32 %v148_v12, 0.0  ;;  %v95_v15 = vadd.f32 %v211_v50, %v94_v13 }
  0xbb   :  { %172 = vst.msk [vmem:[%s424_s3 + $0x30] sm:$0xff] %vm165_vm0, %v162_v14  ;;  %v139_v17 = vadd.f32 %v138_v11, %v95_v15 }
  0xbc   :  { %v106_v18 = vpop.f32.mrf.mxu2 }
  0xbd   :  { %v159_v20 = vmax.f32 %v139_v17, 0.0  ;;  %v107_v21 = vadd.f32 %v211_v50, %v106_v18 }
  0xbe   :  { %v153_v28 = vpop.f32.mrf.mxu3 }
  0xbf   :  { %v141_v22 = vpop.f32.mrf.mxu1  ;;  %169 = vst.msk [vmem:[%s424_s3 + $0x18] sm:$0xff] %vm165_vm0, %v159_v20  ;;  %v151_v24 = vadd.f32 %v150_v16, %v107_v21 }
  0xc0   :  { %v142_v23 = vadd.f32 %v141_v22, %v98_v19 }
  0xc1   :  { %v163_v26 = vmax.f32 %v151_v24, 0.0 }
  0xc2   :  { %v160_v25 = vmax.f32 %v142_v23, 0.0 }
  0xc3   :  { %173 = vst.msk [vmem:[%s424_s3 + $0x38] sm:$0xff] %vm165_vm0, %v163_v26 }
  0xc4   :  { %170 = vst.msk [vmem:[%s424_s3 + $0x20] sm:$0xff] %vm165_vm0, %v160_v25  ;;  %v109_v27 = vpop.f32.mrf.mxu2 }
  0xc5   :  { %v110_v29 = vadd.f32 %v211_v50, %v109_v27 }
  0xc7   :  { %v154_v30 = vadd.f32 %v153_v28, %v110_v29 }
  0xc9   :  { %v164_v31 = vmax.f32 %v154_v30, 0.0 }
  0xcb   :  { %174 = vst.msk [vmem:[%s424_s3 + $0x40] sm:$0xff] %vm165_vm0, %v164_v31 }

</bundles_post_ra>
